<compile_context>
chip_gen: v6e
topology: v6e:2x2x1
jax: 0.10.0
libtpu: 0.0.40
codegen_flags: <defaults>
</compile_context>

<pallas_src>
import numpy as np
import jax
import jax.numpy as jnp
from jax.experimental import pallas as pl
from jax.experimental.pallas import tpu as pltpu


_ROT_IDX = (0, 1, 2, 4, 5, 6, 8, 9, 10)   # flat (4*i + j) indices of the 3x3 rotation block
_TRANS_IDX = (3, 7, 11)                   # flat indices of the translation column (rows 0..2, col 3)


def _merged_selection_matrix(rotation_weight: float, translation_weight: float) -> jax.Array:
    """(128, 16) f32 selection matrix with squared weights folded in.

    Lane l of a packed row holds flat element (l % 16) of local transform g = l // 16.
    Column g   (g < 8): rotation_weight**2    over transform g's 3x3 rotation lanes.
    Column 8+g (g < 8): translation_weight**2 over transform g's translation lanes.
    sqrt(sq @ sel) then yields |rw|*rot_norm in columns 0..7 and |tw|*trans_norm in 8..15.
    """
    sel = np.zeros((128, 16), np.float32)
    rw2 = float(rotation_weight) ** 2
    tw2 = float(translation_weight) ** 2
    for g in range(8):
        for idx in _ROT_IDX:
            sel[16 * g + idx, g] = rw2
        for idx in _TRANS_IDX:
            sel[16 * g + idx, 8 + g] = tw2
    return jnp.asarray(sel)


def _make_loss_kernel(neg_rot: bool, neg_trans: bool):
    def loss_kernel(pred_ref, gt_ref, sel_ref, out_ref):
        # pred_ref / gt_ref: (TB, 128) in native dtype -> upcast in-vreg after the load.
        d = pred_ref[...].astype(jnp.float32) - gt_ref[...].astype(jnp.float32)
        sq = d * d                                                        # VPU
        # Single weighted masked squared-sum reduction as a selection matmul (MXU).
        ss = jnp.dot(sq, sel_ref[...], preferred_element_type=jnp.float32)  # (TB, 16)
        r = jnp.sqrt(ss)                                                   # EUP
        rot = r[:, :8]     # |rw| * ||pred_R - gt_R||_F per transform in the row
        trans = r[:, 8:]   # |tw| * ||pred_t - gt_t||_2 per transform in the row
        if neg_rot:        # trace-time sign fix-up (weights were folded as squares)
            rot = -rot
        if neg_trans:
            trans = -trans
        out_ref[...] = rot + trans
    return loss_kernel


def _sublane_multiple(dtype) -> int:
    # Minimum second-to-last block-dim multiple: f32 -> 8, bf16/f16 -> 16, 8-bit -> 32.
    return max(8, 32 // jnp.dtype(dtype).itemsize)


def _packed_loss(pred_packed: jax.Array, gt_packed: jax.Array,
                 rotation_weight: float, translation_weight: float,
                 block_rows: int) -> jax.Array:
    """pred/gt packed as (rows, 128) (8 transforms per row) -> (rows*8,) f32 loss."""
    rows = pred_packed.shape[0]
    sub = max(_sublane_multiple(pred_packed.dtype), _sublane_multiple(gt_packed.dtype))

    # Cap the tile at ceil(rows/2) (rounded up to the sublane tile) so there are at
    # least 2 grid steps whenever there is enough work: with ("parallel",) semantics
    # this lets both v7x TensorCores run. Ragged last blocks are fine (masked).
    half_rows = -(-rows // 2)
    tb = min(int(block_rows), -(-half_rows // sub) * sub)
    tb = max(tb, sub)
    grid = pl.cdiv(rows, tb)

    sel = _merged_selection_matrix(rotation_weight, translation_weight)
    kernel = _make_loss_kernel(float(rotation_weight) < 0.0, float(translation_weight) < 0.0)

    out = pl.pallas_call(
        kernel,
        out_shape=jax.ShapeDtypeStruct((rows, 8), jnp.float32),
        grid=(grid,),
        in_specs=[
            pl.BlockSpec((tb, 128), lambda i: (i, 0)),
            pl.BlockSpec((tb, 128), lambda i: (i, 0)),
            pl.BlockSpec((128, 16), lambda i: (0, 0)),   # constant block index -> fetched once
        ],
        out_specs=pl.BlockSpec((tb, 8), lambda i: (i, 0)),
        compiler_params=pltpu.CompilerParams(
            dimension_semantics=("parallel",),
            vmem_limit_bytes=48 * 1024 * 1024),
    )(pred_packed, gt_packed, sel)

    # out[r, g] = loss of transform 8*r + g  ->  row-major flatten.
    return out.reshape(rows * 8)


def transformation_loss(pred_transform: jax.Array,
                        gt_transform: jax.Array,
                        rotation_weight: float = 1.0,
                        translation_weight: float = 1.0,
                        block_rows: int = 4096) -> jax.Array:
    """pred_transform, gt_transform: (B, 4, 4) -> (B,) float32 loss."""
    B = pred_transform.shape[0]
    assert pred_transform.shape == gt_transform.shape
    assert pred_transform.shape[1:] == (4, 4)
    if B == 0:
        return jnp.zeros((0,), jnp.float32)

    b_main = (B // 8) * 8
    tail = B - b_main

    parts = []
    if b_main > 0:
        pred_main = pred_transform if tail == 0 else pred_transform[:b_main]
        gt_main = gt_transform if tail == 0 else gt_transform[:b_main]
        # Pack 8 consecutive transforms into each 128-lane row (free row-major reshape,
        # no dtype cast -> no extra HBM pass).
        pred_packed = pred_main.reshape(b_main // 8, 128)
        gt_packed = gt_main.reshape(b_main // 8, 128)
        parts.append(_packed_loss(pred_packed, gt_packed,
                                  rotation_weight, translation_weight, block_rows))
    if tail > 0:
        # <= 7 leftover transforms: plain JAX tail (avoids re-materializing / padding
        # the full inputs just to make B a multiple of 8).
        pt = pred_transform[b_main:].astype(jnp.float32)
        gl = gt_transform[b_main:].astype(jnp.float32)
        d_r = pt[:, :3, :3] - gl[:, :3, :3]
        d_t = pt[:, :3, 3] - gl[:, :3, 3]
        parts.append(rotation_weight * jnp.sqrt(jnp.sum(d_r * d_r, axis=(1, 2)))
                     + translation_weight * jnp.sqrt(jnp.sum(d_t * d_t, axis=1)))

    return parts[0] if len(parts) == 1 else jnp.concatenate(parts)


def _reference_loss(pred, gt, rw=1.0, tw=1.0):
    pred_R = pred[:, :3, :3]
    gt_R = gt[:, :3, :3]
    pred_t = pred[:, :3, 3]
    gt_t = gt[:, :3, 3]
    rot = jnp.sqrt(jnp.sum((pred_R - gt_R) ** 2, axis=(1, 2)))
    trans = jnp.sqrt(jnp.sum((pred_t - gt_t) ** 2, axis=1))
    return rw * rot + tw * trans


if __name__ == "__main__":
    key = jax.random.PRNGKey(0)
    k1, k2, k3, k4, k5, k6 = jax.random.split(key, 6)

    # Case 1: small batch (single ragged block), default weights.
    B = 8
    pred = jax.random.normal(k1, (B, 4, 4), dtype=jnp.float32)
    gt = jax.random.normal(k2, (B, 4, 4), dtype=jnp.float32)
    loss = jax.block_until_ready(transformation_loss(pred, gt, 1.0, 1.0))
    ref = _reference_loss(pred, gt, 1.0, 1.0)
    assert loss.shape == (B,)
    assert jnp.allclose(loss, ref, rtol=1e-5, atol=1e-5), (loss, ref)

    # Case 2: ragged batch (B % 8 != 0 -> plain-JAX tail) + non-unit weights.
    B2 = 13
    pred2 = jax.random.normal(k3, (B2, 4, 4), dtype=jnp.float32)
    gt2 = jax.random.normal(k4, (B2, 4, 4), dtype=jnp.float32)
    loss2 = jax.block_until_ready(
        transformation_loss(pred2, gt2, rotation_weight=0.7, translation_weight=1.3))
    ref2 = _reference_loss(pred2, gt2, 0.7, 1.3)
    assert loss2.shape == (B2,)
    assert jnp.allclose(loss2, ref2, rtol=1e-5, atol=1e-5), (loss2, ref2)

    # Case 3: bf16 inputs (in-kernel upcast), 2-step grid with a partial last block.
    B3 = 1000
    pred3 = jax.random.normal(k5, (B3, 4, 4), dtype=jnp.float32).astype(jnp.bfloat16)
    gt3 = jax.random.normal(k6, (B3, 4, 4), dtype=jnp.float32).astype(jnp.bfloat16)
    loss3 = jax.block_until_ready(transformation_loss(pred3, gt3, 1.0, 1.0))
    ref3 = _reference_loss(pred3.astype(jnp.float32), gt3.astype(jnp.float32), 1.0, 1.0)
    assert loss3.shape == (B3,)
    assert jnp.allclose(loss3, ref3, rtol=1e-4, atol=1e-4), (loss3, ref3)

    print("KERNEL_OK")
</pallas_src>

<mosaic_0001>
module attributes {stable_mosaic.version = 11 : i64} {
  func.func @loss_kernel(%arg0: i32, %arg1: memref<8x128xf32, #tpu.memory_space<vmem>>, %arg2: memref<8x128xf32, #tpu.memory_space<vmem>>, %arg3: memref<128x16xf32, #tpu.memory_space<vmem>>, %arg4: memref<8x8xf32, #tpu.memory_space<vmem>>) attributes {dimension_semantics = [#tpu.dimension_semantics<parallel>], iteration_bounds = array<i64: 1>, scalar_prefetch = 0 : i64, scratch_operands = 0 : i64, tpu.core_type = #tpu.core_type<tc>, window_params = [{transform_indices = @transform_0, window_bounds = array<i64: 8, 128>}, {transform_indices = @transform_1, window_bounds = array<i64: 8, 128>}, {pipeline_mode = #tpu.pipeline_mode<synchronous>, transform_indices = @transform_2, window_bounds = array<i64: 128, 16>}, {transform_indices = @transform_3, window_bounds = array<i64: 8, 8>}]} {
    %c0 = arith.constant 0 : index
    %c0_0 = arith.constant 0 : index
    %0 = vector.load %arg1[%c0, %c0_0] : memref<8x128xf32, #tpu.memory_space<vmem>>, vector<8x128xf32>
    %c0_1 = arith.constant 0 : index
    %c0_2 = arith.constant 0 : index
    %1 = vector.load %arg2[%c0_1, %c0_2] : memref<8x128xf32, #tpu.memory_space<vmem>>, vector<8x128xf32>
    %2 = arith.subf %0, %1 : vector<8x128xf32>
    %3 = arith.mulf %2, %2 : vector<8x128xf32>
    %c0_3 = arith.constant 0 : index
    %c0_4 = arith.constant 0 : index
    %4 = vector.load %arg3[%c0_3, %c0_4] : memref<128x16xf32, #tpu.memory_space<vmem>>, vector<128x16xf32>
    %cst = arith.constant dense<0.000000e+00> : vector<8x16xf32>
    %5 = tpu.matmul %3, %4, %cst {dimension_numbers = #tpu.dot_dimension_numbers<[1], [0], [0], [1], [0, 0, 1, 1], [], []>} : vector<8x128xf32>, vector<128x16xf32>, vector<8x16xf32> -> vector<8x16xf32>
    %6 = math.sqrt %5 : vector<8x16xf32>
    %7 = vector.extract_strided_slice %6 {offsets = [0, 0], sizes = [8, 8], strides = [1, 1]} : vector<8x16xf32> to vector<8x8xf32>
    %8 = vector.extract_strided_slice %6 {offsets = [0, 8], sizes = [8, 8], strides = [1, 1]} : vector<8x16xf32> to vector<8x8xf32>
    %9 = arith.addf %7, %8 : vector<8x8xf32>
    %c0_5 = arith.constant 0 : index
    %c0_6 = arith.constant 0 : index
    %10 = vector.load %arg4[%c0_5, %c0_6] : memref<8x8xf32, #tpu.memory_space<vmem>>, vector<8x8xf32>
    tpu.vector_store %arg4[%c0_5, %c0_6], %9 {strides = array<i32>} : memref<8x8xf32, #tpu.memory_space<vmem>>, vector<8x8xf32>,
    return
  }
  func.func @transform_0(%arg0: i32) -> (i32, i32) {
    %c0_i32 = arith.constant 0 : i32
    %c0_i32_0 = arith.constant 0 : i32
    return %arg0, %c0_i32 : i32, i32
  }
  func.func @transform_1(%arg0: i32) -> (i32, i32) {
    %c0_i32 = arith.constant 0 : i32
    %c0_i32_0 = arith.constant 0 : i32
    return %arg0, %c0_i32 : i32, i32
  }
  func.func @transform_2(%arg0: i32) -> (i32, i32) {
    %c0_i32 = arith.constant 0 : i32
    %c0_i32_0 = arith.constant 0 : i32
    %c0_i32_1 = arith.constant 0 : i32
    return %c0_i32, %c0_i32_0 : i32, i32
  }
  func.func @transform_3(%arg0: i32) -> (i32, i32) {
    %c0_i32 = arith.constant 0 : i32
    %c0_i32_0 = arith.constant 0 : i32
    return %arg0, %c0_i32 : i32, i32
  }
}

</mosaic_0001>

<bundles_post_ra>
// kernel: tpu_custom_call.1
= control target key start
LH: loop header
LB: loop body
LE: loop exit
PB: predicated region body
PF: predicated region fallthrough
CT: control target
= control target key end

     0   :  { %8 = vsyncpa [#allocation3], 0  ;;  %v217_v1 = vmov 0.0   ;;  %vm218_vm0 = vmmov 0   ;;  %s219_s19 = smov 120   ;;  %vm117_vm3 = vcmask 64512   ;;  %s300_s0 = inlined_call_operand.vmem [shape: f32[1,128], index: 0, kind: input, shape index: {}]   ;;  %s301_s1 = inlined_call_operand.vmem [shape: f32[1,128], index: 1, kind: input, shape index: {}]   ;;  %s302_s2 = inlined_call_operand.vmem [shape: f32[128,16], index: 2, kind: input, shape index: {}]   ;;  %s303_s3 = inlined_call_operand.hbm [shape: f32[1,8], index: 3, kind: output, shape index: {}]  }
   0x1   :  { %v34_v0 = vld [vmem:[%s302_s2 + $0x78] sm:$0xff]  ;;  %152 = vmatprep.subr.mxu0 %v217_v1  ;;  %v33_v2 = vld [vmem:[%s302_s2 + $0x70] sm:$0xff]  ;;  %184 = vmatprep.mubr.msk.f32.mxu0 %vm218_vm0, %v217_v1  ;;  %v32_v3 = vld [vmem:[%s302_s2 + $0x68] sm:$0xff] }
   0x2   :  { %153 = vmatpush3.msra.mxu0 %v34_v0  ;;  %v31_v4 = vld [vmem:[%s302_s2 + $0x60] sm:$0xff]  ;;  %v30_v5 = vld [vmem:[%s302_s2 + $0x58] sm:$0xff]  ;;  %v29_v6 = vld [vmem:[%s302_s2 + $0x50] sm:$0xff] }
   0x3   :  { %154 = vmatprep.subr.mxu0 %v217_v1  ;;  %v28_v7 = vld [vmem:[%s302_s2 + $0x48] sm:$0xff]  ;;  %v27_v8 = vld [vmem:[%s302_s2 + $0x40] sm:$0xff]  ;;  %v26_v9 = vld [vmem:[%s302_s2 + $0x38] sm:$0xff] }
   0x4   :  { %155 = vmatpush3.msra.mxu0 %v33_v2  ;;  %v25_v10 = vld [vmem:[%s302_s2 + $0x30] sm:$0xff]  ;;  %v24_v11 = vld [vmem:[%s302_s2 + $0x28] sm:$0xff]  ;;  %v23_v12 = vld [vmem:[%s302_s2 + $0x20] sm:$0xff] }
   0x5   :  { %156 = vmatprep.subr.mxu0 %v217_v1  ;;  %v15_v13 = vld [vmem:[%s300_s0] sm:$0xff]  ;;  %v22_v15 = vld [vmem:[%s302_s2 + $0x18] sm:$0xff]  ;;  %v21_v16 = vld [vmem:[%s302_s2 + $0x10] sm:$0xff] }
   0x6   :  { %157 = vmatpush3.msra.mxu0 %v32_v3  ;;  %v16_v14 = vld [vmem:[%s301_s1] sm:$0xff]  ;;  %v20_v18 = vld [vmem:[%s302_s2 + $0x8] sm:$0xff] }
   0x7   :  { %158 = vmatprep.subr.mxu0 %v217_v1  ;;  %v17_v17 = vsub.f32 %v15_v13, %v16_v14  ;;  %v19_v19 = vld [vmem:[%s302_s2] sm:$0xff] }
   0x8   :  { %159 = vmatpush3.msra.mxu0 %v31_v4 }
   0x9   :  { %160 = vmatprep.subr.mxu0 %v217_v1  ;;  %v18_v20 = vmul.f32 %v17_v17, %v17_v17 }
   0xa   :  { %161 = vmatpush3.msra.mxu0 %v30_v5 }
   0xb   :  { %162 = vmatprep.subr.mxu0 %v217_v1 }
   0xc   :  { %163 = vmatpush3.msra.mxu0 %v29_v6 }
   0xd   :  { %164 = vmatprep.subr.mxu0 %v217_v1 }
   0xe   :  { %165 = vmatpush3.msra.mxu0 %v28_v7 }
   0xf   :  { %166 = vmatprep.subr.mxu0 %v217_v1 }
  0x10   :  { %167 = vmatpush3.msra.mxu0 %v27_v8 }
  0x11   :  { %168 = vmatprep.subr.mxu0 %v217_v1 }
  0x12   :  { %169 = vmatpush3.msra.mxu0 %v26_v9 }
  0x13   :  { %170 = vmatprep.subr.mxu0 %v217_v1 }
  0x14   :  { %171 = vmatpush3.msra.mxu0 %v25_v10 }
  0x15   :  { %172 = vmatprep.subr.mxu0 %v217_v1 }
  0x16   :  { %173 = vmatpush3.msra.mxu0 %v24_v11 }
  0x17   :  { %174 = vmatprep.subr.mxu0 %v217_v1 }
  0x18   :  { %175 = vmatpush3.msra.mxu0 %v23_v12 }
  0x19   :  { %176 = vmatprep.subr.mxu0 %v217_v1 }
  0x1a   :  { %177 = vmatpush3.msra.mxu0 %v22_v15 }
  0x1b   :  { %178 = vmatprep.subr.mxu0 %v217_v1 }
  0x1c   :  { %179 = vmatpush3.msra.mxu0 %v21_v16 }
  0x1d   :  { %180 = vmatprep.subr.mxu0 %v217_v1 }
  0x1e   :  { %181 = vmatpush3.msra.mxu0 %v20_v18 }
  0x1f   :  { %182 = vmatprep.subr.mxu0 %v217_v1 }
  0x20   :  { %183 = vmatpush3.msra.mxu0 %v19_v19 }
  0x21   :  { %185 = vmatmul.mubr.f32.vlgmr.msra.gmra.mxu0 %v18_v20 }
  0xe1   :  { %v101_v21 = vpop.f32.mrf.mxu0 }
  0xe2   :  { %193 = vrsqrt.f32 %v101_v21  ;;  %vm107_vm1 = vcmp.eq.f32.partialorder %v101_v21, inf  ;;  %v110_v25 = vand.u32 2147483648, %v101_v21  ;;  %vm109_vm2 = vcmp.eq.f32.partialorder %v101_v21, 0.0 }
  0xe3   :  { %v186_v22 = vpop.f32.mrf.mxu0 }
  0xef   :  { %v194_v23 = vpop.eup %193 }
  0xf0   :  { %v106_v24 = vmul.f32 %v194_v23, %v101_v21 }
  0xf2   :  { %v108_v26 = vsel %vm107_vm1, %v101_v21, %v106_v24 }
  0xf3   :  { %v111_v27 = vsel %vm109_vm2, %v110_v25, %v108_v26 }
  0xf4   :  { %113 = vrot.lane.b32.xlu0 %v111_v27, %s219_s19 }
 0x166   :  { %v114_v28 = vpop.permute.xlu0 %113 }
 0x167   :  { %v116_v29 = vadd.f32 %v114_v28, %v111_v27 }
 0x169   :  { %118 = vst.msk [vmem:[#allocation2] sm:$0xff] %vm117_vm3, %v116_v29 }
 0x16a   :  { %123 = vsyncadd [#allocation3], 112  ;;  %s220_s2 = smov [#allocation2]  }
 0x16b   :  { %s124_s20 = sshll.u32 %s220_s2, 4  ;;  %s125_s20 = int_to_ptr.vmem [resolvable:$true] %s124_s20 }
 0x16c   :  { %s195_s21 = scalar_lea.vmem %s125_s20, 16  ;;  %s199_s22 = scalar_lea.vmem %s125_s20, 128 }
 0x16d   :  { %p196_p0 = scmp.ne.s32.totalorder %s125_s20, %s195_s21  ;;  %p200_p1 = scmp.lt.s32.totalorder %s125_s20, %s125_s20 }
 0x16e   :  { %p201_p2 = scmp.lt.s32.totalorder %s199_s22, %s195_s21 }
 0x170   :  { %p202_p3 = por %p201_p2, %p200_p1 }
 0x172   :  { %p203_p4 = pnand %p202_p3, %p196_p0 }
 0x174   :  { %206 = shalt.err (!%p203_p4)
}
 0x175   :  { %s221_s23 = smov 16   ;;  %s222_s24 = smov 1  }
 0x176   :  { %130 = dma.vmem_to_hbm [thread:$0]  %s125_s20, 16, %s303_s3, [#allocation3], %s221_s23, %s221_s23, %s222_s24  }
 0x177   :  { %215 = dma.done.wait [#allocation3], 128  }
 0x178   :  { %216 = vsyncadd [#allocation3], 4294967168 }
 0x179   :  { %134 = vsyncpa [#allocation3], 1 }

</bundles_post_ra>
